<compile_context>
chip_gen: v7x
topology: tpu7x:2x2x1
jax: 0.10.0
libtpu: 0.0.40
codegen_flags: <defaults>
</compile_context>

<pallas_src>
import functools
import math

import jax
import jax.numpy as jnp
from jax.experimental import pallas as pl
from jax.experimental.pallas import tpu as pltpu

LANES = 128
SUBLANES = 8
DEFAULT_TILE_ROWS = 4096            # (4096, 128) f32 block = 2 MiB per input
VMEM_LIMIT_BYTES = 32 * 1024 * 1024  # fits every generation (v5e phys 128 MiB)
_LOG_LO = float(math.log(1e-7))      # log(1e-7)
_LOG_HI = float(math.log1p(-1e-7))   # log(1 - 1e-7)


def _round_up(x, m):
    return (x + m - 1) // m * m


def _num_parallel_splits():
    """2 on multi-TensorCore parts (v7x, megacore v4/v5p), 1 on v5e/v6e."""
    try:
        kind = jax.devices()[0].device_kind.lower()
    except Exception:
        return 1
    single_tc_tags = ("v5e", "v5 lite", "v5lite", "v6e", "v6 lite", "v6lite",
                      "v2", "v3")
    if any(tag in kind for tag in single_tc_tags):
        return 1
    return 2  # v4 / v5p megacore, v7x, or unknown (split is harmless if wrong)


def _bce_terms(x, t, v, alpha):
    """-exp(-v*alpha) * (t*log(p) + (1-t)*log(1-p)), p = clamp(sigmoid(x))."""
    # log(sigmoid(x)) = min(x,0) - log(1+exp(-|x|)); log(1-p) = log(sigmoid(-x))
    #                 = log(sigmoid(x)) - x.
    # Clamping the log terms reproduces clamp(p, 1e-7, 1-1e-7) exactly.
    log_z = jnp.log(1.0 + jnp.exp(-jnp.abs(x)))
    log_p_raw = jnp.minimum(x, 0.0) - log_z
    log_q_raw = log_p_raw - x
    log_p = jnp.clip(log_p_raw, _LOG_LO, _LOG_HI)
    log_q = jnp.clip(log_q_raw, _LOG_LO, _LOG_HI)
    w = jnp.exp(v * (-alpha))
    # t*log_p + (1-t)*log_q == log_q + t*(log_p - log_q)
    return -w * (log_q + t * (log_p - log_q))


def _bce_kernel(x_ref, t_ref, v_ref, o_ref, acc_ref, *, alpha, n_rows,
                tile_rows, steps_per_split):
    c = pl.program_id(0)   # "parallel" split (both TCs on multi-TC parts)
    s = pl.program_id(1)   # sequential reduction steps within the split

    @pl.when(s == 0)
    def _init():
        acc_ref[...] = jnp.zeros_like(acc_ref)

    x = x_ref[...].astype(jnp.float32)
    t = t_ref[...].astype(jnp.float32)
    v = v_ref[...].astype(jnp.float32)
    term = _bce_terms(x, t, v, alpha)

    # Rows of this tile that lie inside the real array. Only boundary /
    # overhang tiles take the masked branch; the hot loop is mask-free.
    rem_rows = n_rows - (c * steps_per_split + s) * tile_rows

    @pl.when(rem_rows >= tile_rows)
    def _full():
        acc_ref[...] += jnp.sum(
            term.reshape(tile_rows // SUBLANES, SUBLANES, LANES), axis=0)

    @pl.when(rem_rows < tile_rows)
    def _partial():
        row_ids = jax.lax.broadcasted_iota(jnp.int32, term.shape, 0)
        # Keep this a select (not multiply): padded/garbage rows may hold NaN.
        masked = jnp.where(row_ids < rem_rows, term, 0.0)
        acc_ref[...] += jnp.sum(
            masked.reshape(tile_rows // SUBLANES, SUBLANES, LANES), axis=0)

    @pl.when(s == pl.num_programs(1) - 1)
    def _finalize():
        o_ref[...] = acc_ref[...]


def _as_kernel_dtype(a):
    # f32 / bf16 / f16 stream through untouched (no extra HBM pass);
    # anything else (ints, f64) gets one cast.
    if a.dtype in (jnp.float32, jnp.bfloat16, jnp.float16):
        return a
    return a.astype(jnp.float32)


def bayes_bce_loss(inputs, targets, vars_, alpha=1000.0, beta=10.0):
    """Pallas TPU equivalent of BayesBCELoss(alpha, beta)(inputs, targets, vars)."""
    x = jnp.reshape(_as_kernel_dtype(inputs), (-1,))
    t = jnp.reshape(_as_kernel_dtype(targets), (-1,))
    v = jnp.reshape(_as_kernel_dtype(vars_), (-1,))
    n = int(x.shape[0])
    scale = jnp.float32(float(beta) / n)

    n_main = (n // LANES) * LANES
    if n_main == 0:
        # Tiny input (< 128 elems): pure jnp fallback.
        tsum = jnp.sum(_bce_terms(x.astype(jnp.float32), t.astype(jnp.float32),
                                  v.astype(jnp.float32), float(alpha)))
        return tsum * scale

    if n_main < n:
        # TODO(synk): when n % 128 != 0 this prefix slice may materialize a
        # copy of the main body; only the <128-elem tail truly needs jnp.
        xm, tm, vm = x[:n_main], t[:n_main], v[:n_main]
    else:
        xm, tm, vm = x, t, v

    rows = n_main // LANES
    x2 = xm.reshape(rows, LANES)
    t2 = tm.reshape(rows, LANES)
    v2 = vm.reshape(rows, LANES)

    # Biggest lane-dense tile that fits comfortably in VMEM on every
    # generation (3 inputs x 2 buffers x 2 MiB + 4 KiB accumulator ~= 12 MiB,
    # under the explicit 32 MiB limit below).
    tile_rows = min(DEFAULT_TILE_ROWS, _round_up(rows, 16))
    total_steps = pl.cdiv(rows, tile_rows)

    # Split rows over a leading "parallel" axis so both TensorCores work on
    # disjoint row ranges on multi-TC chips. Uneven splits are fine: the input
    # index_map clamps the overhang block index (never fully out of bounds)
    # and the rem_rows mask zeroes its contribution.
    num_splits = _num_parallel_splits() if total_steps >= 2 else 1
    steps_per_split = pl.cdiv(total_steps, num_splits)

    kernel = functools.partial(
        _bce_kernel, alpha=float(alpha), n_rows=rows, tile_rows=tile_rows,
        steps_per_split=steps_per_split)

    def in_index(c, s):
        g = c * steps_per_split + s
        return (jnp.minimum(g, total_steps - 1), 0)

    in_blk = pl.BlockSpec((tile_rows, LANES), in_index)

    partial_sums = pl.pallas_call(
        kernel,
        out_shape=jax.ShapeDtypeStruct((num_splits * SUBLANES, LANES),
                                       jnp.float32),
        grid_spec=pltpu.PrefetchScalarGridSpec(
            num_scalar_prefetch=0,
            grid=(num_splits, steps_per_split),
            in_specs=[in_blk, in_blk, in_blk],
            out_specs=pl.BlockSpec((SUBLANES, LANES), lambda c, s: (c, 0)),
            scratch_shapes=[pltpu.VMEM((SUBLANES, LANES), jnp.float32)]),
        compiler_params=pltpu.CompilerParams(
            dimension_semantics=("parallel", "arbitrary"),
            vmem_limit_bytes=VMEM_LIMIT_BYTES),
    )(x2, t2, v2)

    total = jnp.sum(partial_sums, dtype=jnp.float32)
    if n_main < n:  # sub-128 lane tail handled outside the kernel (< 128 elems)
        total = total + jnp.sum(_bce_terms(x[n_main:].astype(jnp.float32),
                                           t[n_main:].astype(jnp.float32),
                                           v[n_main:].astype(jnp.float32),
                                           float(alpha)))
    return total * scale


def _reference(inputs, targets, vars_, alpha=1000.0, beta=10.0):
    p = jax.nn.sigmoid(inputs.astype(jnp.float32))
    p = jnp.clip(p, 1e-7, 1.0 - 1e-7).reshape(-1)
    t = targets.astype(jnp.float32).reshape(-1)
    v = vars_.astype(jnp.float32).reshape(-1)
    bce = jnp.mean(-jnp.exp(-v * alpha) * (t * jnp.log(p) + (1.0 - t) * jnp.log(1.0 - p)))
    return bce * beta


if __name__ == "__main__":
    key = jax.random.PRNGKey(0)
    k1, k2, k3 = jax.random.split(key, 3)

    B, C, H, W = 2, 4, 16, 16  # NCHW, small synthetic shapes
    inputs = jax.random.normal(k1, (B, C, H, W), dtype=jnp.float32)           # logits
    targets = jax.random.bernoulli(k2, 0.5, (B, C, H, W)).astype(jnp.float32)
    vars_ = jax.random.uniform(k3, (B, C, H, W), dtype=jnp.float32,
                               minval=0.0, maxval=1e-3)                        # small variances

    loss = jax.block_until_ready(bayes_bce_loss(inputs, targets, vars_))
    ref = jax.block_until_ready(_reference(inputs, targets, vars_))

    assert jnp.allclose(loss, ref, rtol=1e-4, atol=1e-5), (loss, ref)
    print("KERNEL_OK")
</pallas_src>

<mosaic_0001>
module attributes {stable_mosaic.version = 11 : i64} {
  func.func @_bce_kernel(%arg0: i32, %arg1: i32, %arg2: memref<16x128xf32, #tpu.memory_space<vmem>>, %arg3: memref<16x128xf32, #tpu.memory_space<vmem>>, %arg4: memref<16x128xf32, #tpu.memory_space<vmem>>, %arg5: memref<8x128xf32, #tpu.memory_space<vmem>>, %arg6: memref<8x128xf32, #tpu.memory_space<vmem>>) attributes {dimension_semantics = [#tpu.dimension_semantics<parallel>, #tpu.dimension_semantics<arbitrary>], iteration_bounds = array<i64: 1, 1>, scalar_prefetch = 0 : i64, scratch_operands = 1 : i64, tpu.core_type = #tpu.core_type<tc>, window_params = [{transform_indices = @transform_0, window_bounds = array<i64: 16, 128>}, {transform_indices = @transform_1, window_bounds = array<i64: 16, 128>}, {transform_indices = @transform_2, window_bounds = array<i64: 16, 128>}, {transform_indices = @transform_3, window_bounds = array<i64: 8, 128>}]} {
    %c0_i32 = arith.constant 0 : i32
    %0 = arith.cmpi eq, %arg1, %c0_i32 : i32
    %1 = arith.extui %0 : i1 to i32
    %c0_i32_0 = arith.constant 0 : i32
    %2 = arith.cmpi ne, %1, %c0_i32_0 : i32
    scf.if %2 {
      %cst_21 = arith.constant 0.000000e+00 : f32
      %47 = vector.broadcast %cst_21 : f32 to vector<8x128xf32>
      %c0_22 = arith.constant 0 : index
      %c0_23 = arith.constant 0 : index
      %48 = vector.load %arg6[%c0_22, %c0_23] : memref<8x128xf32, #tpu.memory_space<vmem>>, vector<8x128xf32>
      tpu.vector_store %arg6[%c0_22, %c0_23], %47 {strides = array<i32>} : memref<8x128xf32, #tpu.memory_space<vmem>>, vector<8x128xf32>,
    } else {
    }
    %c0 = arith.constant 0 : index
    %c0_1 = arith.constant 0 : index
    %3 = vector.load %arg2[%c0, %c0_1] : memref<16x128xf32, #tpu.memory_space<vmem>>, vector<16x128xf32>
    %c0_2 = arith.constant 0 : index
    %c0_3 = arith.constant 0 : index
    %4 = vector.load %arg3[%c0_2, %c0_3] : memref<16x128xf32, #tpu.memory_space<vmem>>, vector<16x128xf32>
    %c0_4 = arith.constant 0 : index
    %c0_5 = arith.constant 0 : index
    %5 = vector.load %arg4[%c0_4, %c0_5] : memref<16x128xf32, #tpu.memory_space<vmem>>, vector<16x128xf32>
    %6 = math.absf %3 : vector<16x128xf32>
    %cst = arith.constant 0.000000e+00 : f32
    %7 = vector.broadcast %cst : f32 to vector<16x128xf32>
    %8 = arith.subf %7, %6 : vector<16x128xf32>
    %9 = math.exp %8 : vector<16x128xf32>
    %cst_6 = arith.constant 1.000000e+00 : f32
    %10 = vector.broadcast %cst_6 : f32 to vector<16x128xf32>
    %11 = arith.addf %10, %9 : vector<16x128xf32>
    %12 = math.log %11 : vector<16x128xf32>
    %cst_7 = arith.constant 0.000000e+00 : f32
    %13 = vector.broadcast %cst_7 : f32 to vector<16x128xf32>
    %14 = arith.minimumf %3, %13 : vector<16x128xf32>
    %15 = arith.subf %14, %12 : vector<16x128xf32>
    %16 = arith.subf %15, %3 : vector<16x128xf32>
    %cst_8 = arith.constant -16.1180954 : f32
    %cst_9 = arith.constant -1.00000008E-7 : f32
    %17 = vector.broadcast %cst_8 : f32 to vector<16x128xf32>
    %18 = arith.maximumf %17, %15 : vector<16x128xf32>
    %19 = vector.broadcast %cst_9 : f32 to vector<16x128xf32>
    %20 = arith.minimumf %19, %18 : vector<16x128xf32>
    %cst_10 = arith.constant -16.1180954 : f32
    %cst_11 = arith.constant -1.00000008E-7 : f32
    %21 = vector.broadcast %cst_10 : f32 to vector<16x128xf32>
    %22 = arith.maximumf %21, %16 : vector<16x128xf32>
    %23 = vector.broadcast %cst_11 : f32 to vector<16x128xf32>
    %24 = arith.minimumf %23, %22 : vector<16x128xf32>
    %cst_12 = arith.constant -1.000000e+03 : f32
    %25 = vector.broadcast %cst_12 : f32 to vector<16x128xf32>
    %26 = arith.mulf %5, %25 : vector<16x128xf32>
    %27 = math.exp %26 : vector<16x128xf32>
    %cst_13 = arith.constant 0.000000e+00 : f32
    %28 = vector.broadcast %cst_13 : f32 to vector<16x128xf32>
    %29 = arith.subf %28, %27 : vector<16x128xf32>
    %30 = arith.subf %20, %24 : vector<16x128xf32>
    %31 = arith.mulf %4, %30 : vector<16x128xf32>
    %32 = arith.addf %24, %31 : vector<16x128xf32>
    %33 = arith.mulf %29, %32 : vector<16x128xf32>
    %c1_i32 = arith.constant 1 : i32
    %34 = arith.muli %arg0, %c1_i32 : i32
    %35 = arith.addi %34, %arg1 : i32
    %c16_i32 = arith.constant 16 : i32
    %36 = arith.muli %35, %c16_i32 : i32
    %c16_i32_14 = arith.constant 16 : i32
    %37 = arith.subi %c16_i32_14, %36 : i32
    %c16_i32_15 = arith.constant 16 : i32
    %38 = arith.cmpi sge, %37, %c16_i32_15 : i32
    %39 = arith.extui %38 : i1 to i32
    %c0_i32_16 = arith.constant 0 : i32
    %40 = arith.cmpi ne, %39, %c0_i32_16 : i32
    scf.if %40 {
      %c0_21 = arith.constant 0 : index
      %c0_22 = arith.constant 0 : index
      %47 = vector.load %arg6[%c0_21, %c0_22] : memref<8x128xf32, #tpu.memory_space<vmem>>, vector<8x128xf32>
      %48 = vector.shape_cast %33 : vector<16x128xf32> to vector<2x8x128xf32>
      %cst_23 = arith.constant dense<0.000000e+00> : vector<8x128xf32>
      %49 = vector.multi_reduction <add>, %48, %cst_23 [0] : vector<2x8x128xf32> to vector<8x128xf32>
      %50 = arith.addf %47, %49 : vector<8x128xf32>
      %c0_24 = arith.constant 0 : index
      %c0_25 = arith.constant 0 : index
      %51 = vector.load %arg6[%c0_24, %c0_25] : memref<8x128xf32, #tpu.memory_space<vmem>>, vector<8x128xf32>
      tpu.vector_store %arg6[%c0_24, %c0_25], %50 {strides = array<i32>} : memref<8x128xf32, #tpu.memory_space<vmem>>, vector<8x128xf32>,
    } else {
    }
    %c16_i32_17 = arith.constant 16 : i32
    %41 = arith.cmpi slt, %37, %c16_i32_17 : i32
    %42 = arith.extui %41 : i1 to i32
    %c0_i32_18 = arith.constant 0 : i32
    %43 = arith.cmpi ne, %42, %c0_i32_18 : i32
    scf.if %43 {
      %47 = tpu.iota {dimensions = array<i32: 0>} : vector<16x128xi32>
      %48 = vector.broadcast %37 : i32 to vector<16x128xi32>
      %49 = arith.cmpi slt, %47, %48 : vector<16x128xi32>
      %cst_21 = arith.constant 0.000000e+00 : f32
      %50 = vector.broadcast %cst_21 : f32 to vector<16x128xf32>
      %51 = arith.select %49, %33, %50 : vector<16x128xi1>, vector<16x128xf32>
      %c0_22 = arith.constant 0 : index
      %c0_23 = arith.constant 0 : index
      %52 = vector.load %arg6[%c0_22, %c0_23] : memref<8x128xf32, #tpu.memory_space<vmem>>, vector<8x128xf32>
      %53 = vector.shape_cast %51 : vector<16x128xf32> to vector<2x8x128xf32>
      %cst_24 = arith.constant dense<0.000000e+00> : vector<8x128xf32>
      %54 = vector.multi_reduction <add>, %53, %cst_24 [0] : vector<2x8x128xf32> to vector<8x128xf32>
      %55 = arith.addf %52, %54 : vector<8x128xf32>
      %c0_25 = arith.constant 0 : index
      %c0_26 = arith.constant 0 : index
      %56 = vector.load %arg6[%c0_25, %c0_26] : memref<8x128xf32, #tpu.memory_space<vmem>>, vector<8x128xf32>
      tpu.vector_store %arg6[%c0_25, %c0_26], %55 {strides = array<i32>} : memref<8x128xf32, #tpu.memory_space<vmem>>, vector<8x128xf32>,
    } else {
    }
    %c0_i32_19 = arith.constant 0 : i32
    %44 = arith.cmpi eq, %arg1, %c0_i32_19 : i32
    %45 = arith.extui %44 : i1 to i32
    %c0_i32_20 = arith.constant 0 : i32
    %46 = arith.cmpi ne, %45, %c0_i32_20 : i32
    scf.if %46 {
      %c0_21 = arith.constant 0 : index
      %c0_22 = arith.constant 0 : index
      %47 = vector.load %arg6[%c0_21, %c0_22] : memref<8x128xf32, #tpu.memory_space<vmem>>, vector<8x128xf32>
      %c0_23 = arith.constant 0 : index
      %c0_24 = arith.constant 0 : index
      %48 = vector.load %arg5[%c0_23, %c0_24] : memref<8x128xf32, #tpu.memory_space<vmem>>, vector<8x128xf32>
      tpu.vector_store %arg5[%c0_23, %c0_24], %47 {strides = array<i32>} : memref<8x128xf32, #tpu.memory_space<vmem>>, vector<8x128xf32>,
    } else {
    }
    return
  }
  func.func @transform_0(%arg0: i32, %arg1: i32) -> (i32, i32) {
    %c1_i32 = arith.constant 1 : i32
    %0 = arith.muli %arg0, %c1_i32 : i32
    %1 = arith.addi %0, %arg1 : i32
    %c0_i32 = arith.constant 0 : i32
    %2 = arith.minsi %1, %c0_i32 : i32
    %c0_i32_0 = arith.constant 0 : i32
    %c0_i32_1 = arith.constant 0 : i32
    return %2, %c0_i32_0 : i32, i32
  }
  func.func @transform_1(%arg0: i32, %arg1: i32) -> (i32, i32) {
    %c1_i32 = arith.constant 1 : i32
    %0 = arith.muli %arg0, %c1_i32 : i32
    %1 = arith.addi %0, %arg1 : i32
    %c0_i32 = arith.constant 0 : i32
    %2 = arith.minsi %1, %c0_i32 : i32
    %c0_i32_0 = arith.constant 0 : i32
    %c0_i32_1 = arith.constant 0 : i32
    return %2, %c0_i32_0 : i32, i32
  }
  func.func @transform_2(%arg0: i32, %arg1: i32) -> (i32, i32) {
    %c1_i32 = arith.constant 1 : i32
    %0 = arith.muli %arg0, %c1_i32 : i32
    %1 = arith.addi %0, %arg1 : i32
    %c0_i32 = arith.constant 0 : i32
    %2 = arith.minsi %1, %c0_i32 : i32
    %c0_i32_0 = arith.constant 0 : i32
    %c0_i32_1 = arith.constant 0 : i32
    return %2, %c0_i32_0 : i32, i32
  }
  func.func @transform_3(%arg0: i32, %arg1: i32) -> (i32, i32) {
    %c0_i32 = arith.constant 0 : i32
    %c0_i32_0 = arith.constant 0 : i32
    return %arg0, %c0_i32 : i32, i32
  }
}

</mosaic_0001>

<bundles_post_ra>
// kernel: tpu_custom_call.1
= control target key start
LH: loop header
LB: loop body
LE: loop exit
PB: predicated region body
PF: predicated region fallthrough
CT: control target
= control target key end

     0   :  { %8 = vsyncpa [#allocation4], 0  ;;  %s397_s0 = inlined_call_operand.hbm [shape: f32[16,128], index: 0, kind: input, shape index: {}]   ;;  %s398_s1 = inlined_call_operand.hbm [shape: f32[16,128], index: 1, kind: input, shape index: {}]   ;;  %s399_s2 = inlined_call_operand.hbm [shape: f32[16,128], index: 2, kind: input, shape index: {}]   ;;  %s400_s3 = inlined_call_operand.hbm [shape: f32[8,128], index: 3, kind: output, shape index: {}]  }
   0x1   :  { %9 = vsyncpa [#allocation7], 0 }
   0x2   :  { %10 = vsyncpa [#allocation5], 0  ;;  %s307_s12 = smov [#allocation6]   ;;  %s308_s14 = smov [#allocation3]  }
   0x3   :  { %s40_s13 = sshll.u32 %s307_s12, 4  ;;  %s22_s15 = sshll.u32 %s308_s14, 4  ;;  %s41_s13 = int_to_ptr.vmem [resolvable:$true] %s40_s13  ;;  %s333_s15 = int_to_ptr.vmem [resolvable:$true] %s22_s15 }
   0x4   :  { %s213_s18 = scalar_lea.hbm %s398_s1, 256 }
   0x5   :  { %p214_p0 = scmp.ne.s32.totalorder %s398_s1, %s213_s18  ;;  %p217_p1 = scmp.lt.u32.totalorder %s213_s18, %s398_s1 }
   0x7   :  { %p219_p2 = pnand %p217_p1, %p214_p0 }
   0x9   :  { %222 = shalt.err (!%p219_p2)
}
   0xa   :  { %s223_s23 = scalar_lea.vmem %s41_s13, 256  ;;  %p228_p4 = scmp.lt.s32.totalorder %s41_s13, %s41_s13 }
   0xb   :  { %p224_p3 = scmp.ne.s32.totalorder %s41_s13, %s223_s23  ;;  %p229_p5 = scmp.lt.s32.totalorder %s223_s23, %s223_s23 }
   0xd   :  { %p230_p6 = por %p229_p5, %p228_p4 }
   0xf   :  { %p231_p7 = pnand %p230_p6, %p224_p3 }
  0x11   :  { %234 = shalt.err (!%p231_p7)
}
  0x12   :  { %s309_s24 = smov 128   ;;  %s310_s25 = smov 8  }
  0x13   :  { %46 = dma.hbm_to_vmem [thread:$0]  %s398_s1, 256, %s41_s13, [#allocation7], %s309_s24, %s309_s24, %s310_s25  }
  0x14   :  { %s235_s30 = scalar_lea.hbm %s397_s0, 256 }
  0x15   :  { %p236_p8 = scmp.ne.s32.totalorder %s397_s0, %s235_s30  ;;  %p239_p9 = scmp.lt.u32.totalorder %s235_s30, %s397_s0 }
  0x17   :  { %p241_p10 = pnand %p239_p9, %p236_p8 }
  0x19   :  { %244 = shalt.err (!%p241_p10)
}
  0x1a   :  { %s245_s8 = scalar_lea.vmem %s333_s15, 256  ;;  %p250_p12 = scmp.lt.s32.totalorder %s333_s15, %s333_s15 }
  0x1b   :  { %p246_p11 = scmp.ne.s32.totalorder %s333_s15, %s245_s8  ;;  %p251_p13 = scmp.lt.s32.totalorder %s245_s8, %s245_s8 }
  0x1d   :  { %p252_p0 = por %p251_p13, %p250_p12 }
  0x1f   :  { %p253_p1 = pnand %p252_p0, %p246_p11 }
  0x21   :  { %256 = shalt.err (!%p253_p1)
}
  0x22   :  { %28 = dma.hbm_to_vmem [thread:$0]  %s397_s0, 256, %s333_s15, [#allocation4], %s309_s24, %s309_s24, %s310_s25  }
  0x23   :  { %s311_s10 = smov [#allocation8]   ;;  %s257_s14 = scalar_lea.hbm %s399_s2, 256 }
  0x24   :  { %s58_s11 = sshll.u32 %s311_s10, 4  ;;  %p258_p2 = scmp.ne.s32.totalorder %s399_s2, %s257_s14  ;;  %s59_s11 = int_to_ptr.vmem [resolvable:$true] %s58_s11 }
  0x25   :  { %p261_p3 = scmp.lt.u32.totalorder %s257_s14, %s399_s2 }
  0x27   :  { %p263_p4 = pnand %p261_p3, %p258_p2 }
  0x29   :  { %266 = shalt.err (!%p263_p4)
}
  0x2a   :  { %s267_s20 = scalar_lea.vmem %s59_s11, 256  ;;  %p272_p6 = scmp.lt.s32.totalorder %s59_s11, %s59_s11 }
  0x2b   :  { %p268_p5 = scmp.ne.s32.totalorder %s59_s11, %s267_s20  ;;  %p273_p7 = scmp.lt.s32.totalorder %s267_s20, %s267_s20 }
  0x2d   :  { %p274_p8 = por %p273_p7, %p272_p6 }
  0x2f   :  { %p275_p9 = pnand %p274_p8, %p268_p5 }
  0x31   :  { %278 = shalt.err (!%p275_p9)
}
  0x32   :  { %64 = dma.hbm_to_vmem [thread:$0]  %s399_s2, 256, %s59_s11, [#allocation7], %s309_s24, %s309_s24, %s310_s25  }
  0x33   :  { %301 = dma.done.wait [#allocation4], 256  }
  0x34   :  { %302 = vsyncadd [#allocation4], 4294967040 }
  0x35   :  { %303 = dma.done.wait [#allocation7], 512  }
  0x36   :  { %304 = vsyncadd [#allocation7], 4294966784  ;;  %v91_v0 = vld [vmem:[#allocation3] sm:$0xff]  ;;  %v92_v1 = vld [vmem:[#allocation3 + $0x8] sm:$0xff]  ;;  %s312_s2 = smov [#allocation9]  }
  0x37   :  { %v97_v2 = vand.u32 2147483647, %v91_v0  ;;  %v98_v3 = vand.u32 2147483647, %v92_v1  ;;  %v95_v11 = vld [vmem:[#allocation8] sm:$0xff]  ;;  %v96_v13 = vld [vmem:[#allocation8 + $0x8] sm:$0xff] }
  0x38   :  { %v125_v14 = vmul.f32 -1000.0, %v95_v11  ;;  %v126_v15 = vmul.f32 -1000.0, %v96_v13  ;;  %v111_v18 = vmin.f32 %v91_v0, 0.0  ;;  %v112_v20 = vmin.f32 %v92_v1, 0.0  ;;  %v93_v36 = vld [vmem:[#allocation6] sm:$0xff]  ;;  %v94_v39 = vld [vmem:[#allocation6 + $0x8] sm:$0xff] }
  0x39   :  { %v99_v4 = vsub.f32 0.0, %v97_v2  ;;  %v100_v5 = vsub.f32 0.0, %v98_v3  ;;  %s179_s21 = sshll.u32 %s312_s2, 4  ;;  %s180_s21 = int_to_ptr.vmem [resolvable:$true] %s179_s21 }
  0x3a   :  { %v127_v16 = vmul.f32 1.442695, %v125_v14  ;;  %v129_v17 = vmul.f32 1.442695, %v126_v15  ;;  %s279_s22 = scalar_lea.vmem %s180_s21, 128  ;;  %p284_p11 = scmp.lt.s32.totalorder %s180_s21, %s180_s21 }
  0x3b   :  { %v101_v6 = vmul.f32 1.442695, %v99_v4  ;;  %v103_v7 = vmul.f32 1.442695, %v100_v5  ;;  %p280_p10 = scmp.ne.s32.totalorder %s180_s21, %s279_s22  ;;  %p285_p12 = scmp.lt.s32.totalorder %s279_s22, %s279_s22 }
  0x3d   :  { %201 = vpow2.f32 %v101_v6  ;;  %p286_p13 = por %p285_p12, %p284_p11 }
  0x3e   :  { %203 = vpow2.f32 %v103_v7 }
  0x3f   :  { %p287_p0 = pnand %p286_p13, %p280_p10 }
  0x47   :  { %v202_v8 = vpop.eup %201 }
  0x48   :  { %v204_v9 = vpop.eup %203  ;;  %v105_v10 = vadd.f32 1.0, %v202_v8 }
  0x49   :  { %v106_v12 = vadd.f32 1.0, %v204_v9 }
  0x4a   :  { %205 = vlog2.f32 %v105_v10 }
  0x4b   :  { %207 = vlog2.f32 %v106_v12 }
  0x4c   :  { %209 = vpow2.f32 %v127_v16 }
  0x4d   :  { %211 = vpow2.f32 %v129_v17 }
  0x54   :  { %v206_v19 = vpop.eup %205 }
  0x55   :  { %v208_v21 = vpop.eup %207  ;;  %v108_v22 = vmul.f32 0.6931472, %v206_v19 }
  0x56   :  { %v110_v23 = vmul.f32 0.6931472, %v208_v21  ;;  %v210_v35 = vpop.eup %209 }
  0x57   :  { %v113_v24 = vsub.f32 %v111_v18, %v108_v22  ;;  %v212_v38 = vpop.eup %211  ;;  %v131_v42 = vsub.f32 0.0, %v210_v35 }
  0x58   :  { %v114_v25 = vsub.f32 %v112_v20, %v110_v23  ;;  %v132_v44 = vsub.f32 0.0, %v212_v38 }
  0x59   :  { %v115_v26 = vsub.f32 %v113_v24, %v91_v0  ;;  %v117_v27 = vmax.f32 %v113_v24, -16.118095 }
  0x5a   :  { %v116_v28 = vsub.f32 %v114_v25, %v92_v1  ;;  %v118_v29 = vmax.f32 %v114_v25, -16.118095 }
  0x5b   :  { %v119_v30 = vmin.f32 %v117_v27, -1.0000001e-07  ;;  %v121_v31 = vmax.f32 %v115_v26, -16.118095 }
  0x5c   :  { %v120_v32 = vmin.f32 %v118_v29, -1.0000001e-07  ;;  %v122_v33 = vmax.f32 %v116_v28, -16.118095 }
  0x5d   :  { %v123_v34 = vmin.f32 %v121_v31, -1.0000001e-07 }
  0x5e   :  { %v124_v37 = vmin.f32 %v122_v33, -1.0000001e-07 }
  0x5f   :  { %v133_v40 = vsub.f32 %v119_v30, %v123_v34 }
  0x60   :  { %v134_v41 = vsub.f32 %v120_v32, %v124_v37 }
  0x61   :  { %v135_v43 = vmul.f32 %v133_v40, %v93_v36 }
  0x62   :  { %v136_v45 = vmul.f32 %v134_v41, %v94_v39 }
  0x63   :  { %v137_v46 = vadd.f32 %v135_v43, %v123_v34 }
  0x64   :  { %v138_v47 = vadd.f32 %v136_v45, %v124_v37 }
  0x65   :  { %v139_v48 = vmul.f32 %v137_v46, %v131_v42 }
  0x66   :  { %v140_v49 = vmul.f32 %v138_v47, %v132_v44 }
  0x68   :  { %v149_v50 = vadd.f32 %v140_v49, %v139_v48 }
  0x6a   :  { %172 = vst [vmem:[#allocation9] sm:$0xff] %v149_v50 }
  0x6b   :  { %290 = shalt.err (!%p287_p0)
}
  0x6c   :  { %s291_s25 = scalar_lea.hbm %s400_s3, 128 }
  0x6d   :  { %p292_p1 = scmp.ne.s32.totalorder %s400_s3, %s291_s25  ;;  %p295_p2 = scmp.lt.u32.totalorder %s291_s25, %s400_s3 }
  0x6f   :  { %p297_p3 = pnand %p295_p2, %p292_p1 }
  0x71   :  { %300 = shalt.err (!%p297_p3)
}
  0x72   :  { %182 = dma.vmem_to_hbm [thread:$0]  %s180_s21, 128, %s400_s3, [#allocation5]  }
  0x73   :  { %305 = dma.done.wait [#allocation5], 128  }
  0x74   :  { %306 = vsyncadd [#allocation5], 4294967168 }
  0x75   :  { %186 = vsyncpa [#allocation4], 1 }
  0x76   :  { %187 = vsyncpa [#allocation7], 1 }
  0x77   :  { %188 = vsyncpa [#allocation5], 1 }

</bundles_post_ra>
